<compile_context>
chip_gen: v6e
topology: v6e:2x2x1
jax: 0.10.0
libtpu: 0.0.40
codegen_flags: <defaults>
</compile_context>

<pallas_src>
import jax
import jax.numpy as jnp
from jax.experimental import pallas as pl
from jax.experimental.pallas import tpu as pltpu


_SQRT_2_OVER_PI = 0.7978845608028654


def _gelu(x):
    # TODO(synk): PyTorch nn.GELU() defaults to the exact erf form; the tanh
    # approximation is used here (and in the in-script reference) to stay on
    # guaranteed-lowered EUP ops (tanh).
    return 0.5 * x * (1.0 + jnp.tanh(_SQRT_2_OVER_PI * (x + 0.044715 * x * x * x)))


def _round_up(x, m):
    return (x + m - 1) // m * m


def _vmem_capacity_bytes():
    """Physical VMEM per core; conservative 64 MiB (v7x) fallback."""
    try:
        info = pltpu.get_tpu_info()
        for attr in ("vmem_capacity_bytes", "vmem_size_bytes", "vmem_bytes"):
            v = getattr(info, attr, None)
            if v:
                return int(v)
    except Exception:
        pass
    return 64 * 1024 * 1024


def _fold_bn(bn, eps=1e-5):
    """Fold eval-mode BatchNorm2d into per-channel (scale, shift)."""
    scale = bn["gamma"] / jnp.sqrt(bn["var"] + eps)
    shift = bn["beta"] - bn["mean"] * scale
    return scale, shift


# ---------------------------------------------------------------------------
# Fused GEMM kernel:  out = [gelu](x @ w + bias) * scale + shift [+ residual]
# ---------------------------------------------------------------------------
def _make_gemm_kernel(apply_gelu, has_residual):
    def kernel(*refs):
        if has_residual:
            x_ref, w_ref, b_ref, s_ref, t_ref, r_ref, o_ref = refs
        else:
            x_ref, w_ref, b_ref, s_ref, t_ref, o_ref = refs
            r_ref = None
        acc = jnp.dot(x_ref[...], w_ref[...], preferred_element_type=jnp.float32)
        acc = acc + b_ref[...]
        if apply_gelu:
            acc = _gelu(acc)
        acc = acc * s_ref[...] + t_ref[...]
        if has_residual:
            acc = acc + r_ref[...].astype(jnp.float32)
        o_ref[...] = acc.astype(o_ref.dtype)
    return kernel


def fused_gemm(x, w, bias, scale, shift, *, residual=None, apply_gelu=True,
               out_dtype=None, allow_input_fusion=False):
    """Tiled-over-M fused matmul on the MXU.

    x: (M, K); w: (K, N); bias/scale/shift: (N,), applied in f32;
    residual: (M, N) or None. K and N are zero-padded to lane-dense multiples
    of 128 (no-op when already aligned, e.g. dim=256); M is tiled with a
    VMEM-budget-adaptive TM (>= 2 grid steps for megacore / v7x).
    """
    M, K = x.shape
    Kw, N = w.shape
    assert Kw == K
    out_dtype = jnp.dtype(out_dtype) if out_dtype is not None else x.dtype
    w = w.astype(x.dtype)

    Kp = _round_up(K, 128)
    Np = _round_up(N, 128)
    if Kp != K:
        x = jnp.pad(x, ((0, 0), (0, Kp - K)))
        w = jnp.pad(w, ((0, Kp - K), (0, 0)))
    if Np != N:
        w = jnp.pad(w, ((0, 0), (0, Np - N)))

    xb = jnp.dtype(x.dtype).itemsize
    ob = jnp.dtype(out_dtype).itemsize
    rb = jnp.dtype(residual.dtype).itemsize if residual is not None else 0

    def footprint(tm):  # double-buffered VMEM bytes for one grid step
        fp = 2 * tm * Kp * xb + 2 * Kp * Np * xb + 6 * Np * 4 + 2 * tm * Np * ob
        if residual is not None:
            fp += 2 * tm * Np * rb
        return fp

    cap = _vmem_capacity_bytes()
    budget = int(0.45 * cap)
    TM = min(2048, _round_up(M, 8))
    if M > 8:                       # >= 2 grid steps so both v7x cores get work
        TM = min(TM, _round_up((M + 1) // 2, 8))
    while TM > 8 and footprint(TM) > budget:
        TM = max(8, _round_up(TM // 2, 8))
    Mp = _round_up(M, TM)
    if Mp != M:
        x = jnp.pad(x, ((0, Mp - M), (0, 0)))

    def row(v):
        v = v.astype(jnp.float32).reshape(1, N)
        return jnp.pad(v, ((0, 0), (0, Np - N))) if Np != N else v

    args = [x, w, row(bias), row(scale), row(shift)]
    in_specs = [
        pl.BlockSpec((TM, Kp), lambda i: (i, 0)),
        pl.BlockSpec((Kp, Np), lambda i: (0, 0)),   # weight stays VMEM-resident
        pl.BlockSpec((1, Np), lambda i: (0, 0)),    # bias constant over M tiles
        pl.BlockSpec((1, Np), lambda i: (0, 0)),    # BN scale
        pl.BlockSpec((1, Np), lambda i: (0, 0)),    # BN shift
    ]
    if residual is not None:
        r = residual
        if Mp != M or Np != N:
            r = jnp.pad(r, ((0, Mp - M), (0, Np - N)))
        args.append(r)
        in_specs.append(pl.BlockSpec((TM, Np), lambda i: (i, 0)))

    bytes_accessed = (xb * (Mp * Kp + Kp * Np) + 4 * 3 * Np + ob * Mp * Np
                      + (rb * Mp * Np if residual is not None else 0))
    cost = pl.CostEstimate(
        flops=2 * Mp * Kp * Np,
        transcendentals=Mp * Np if apply_gelu else 0,
        bytes_accessed=int(bytes_accessed),
    )
    fusion = ([True] + [False] * (len(args) - 1)) if allow_input_fusion else None
    vmem_limit = int(min(0.9 * cap, max(2 * footprint(TM), 32 * 1024 * 1024)))

    out = pl.pallas_call(
        _make_gemm_kernel(apply_gelu, residual is not None),
        out_shape=jax.ShapeDtypeStruct((Mp, Np), out_dtype),
        grid=(Mp // TM,),
        in_specs=in_specs,
        out_specs=pl.BlockSpec((TM, Np), lambda i: (i, 0)),
        compiler_params=pltpu.CompilerParams(
            dimension_semantics=("parallel",),
            allow_input_fusion=fusion,
            vmem_limit_bytes=vmem_limit,
        ),
        cost_estimate=cost,
    )(*args)
    return out[:M, :N]


# ---------------------------------------------------------------------------
# Depthwise 'same' conv + bias + GELU kernel (channels-last, (batch, ch) grid)
# ---------------------------------------------------------------------------
def _make_dw_kernel(H, W, k, r):
    def kernel(x_ref, w_ref, b_ref, o_ref, pad_ref):
        # Build the 'same'-padded image in VMEM scratch (no HBM pad round trip):
        # zero the halo'd buffer, then drop the image into the interior.
        pad_ref[...] = jnp.zeros(pad_ref.shape, pad_ref.dtype)
        pad_ref[:, r:r + H, r:r + W, :] = x_ref[...].astype(pad_ref.dtype)

        wv = w_ref[...].astype(jnp.float32)                 # (k, k, Ct)
        acc = jnp.zeros(o_ref.shape, jnp.float32)           # (1, H, W, Ct)
        # Hoist the W-axis (sublane) shift out of the inner loop: k shifted
        # views instead of k*k sublane relayouts; ky slices only along H.
        for kx in range(k):
            xw = pad_ref[:, :, kx:kx + W, :].astype(jnp.float32)  # (1, Hp, W, Ct)
            for ky in range(k):
                acc = acc + xw[:, ky:ky + H, :, :] * wv[ky, kx]
        acc = _gelu(acc + b_ref[...])
        o_ref[...] = acc.astype(o_ref.dtype)
    return kernel


def depthwise_conv_gelu(x, w_kkc, bias, kernel_size, *, out_dtype=None):
    """Depthwise 'same' conv + bias + GELU, channels-last.

    x: (B, H, W, C); w_kkc: (k, k, C); bias: (C,). The depthwise BatchNorm is
    folded into the following pointwise GEMM by the caller, so only bias+GELU
    live here. Grid = (batch, channel-group); math in f32, output in out_dtype.
    """
    B, H, W, C = x.shape
    k = kernel_size
    # TODO(synk): even kernel sizes need asymmetric 'same' padding.
    assert k % 2 == 1
    r = (k - 1) // 2
    Hp, Wp = H + 2 * r, W + 2 * r
    out_dtype = jnp.dtype(out_dtype) if out_dtype is not None else x.dtype

    if C % 256 == 0 and C > 256:
        TC = 256
    elif C % 128 == 0 and C > 128:
        TC = 128
    else:
        TC = C

    xb = jnp.dtype(x.dtype).itemsize
    ob = jnp.dtype(out_dtype).itemsize
    fp = (2 * H * W * TC * xb + 2 * k * k * TC * 4 + 2 * TC * 4
          + 2 * H * W * TC * ob + Hp * Wp * TC * 4)
    cap = _vmem_capacity_bytes()
    vmem_limit = int(min(0.9 * cap, max(2 * fp, 32 * 1024 * 1024)))

    return pl.pallas_call(
        _make_dw_kernel(H, W, k, r),
        out_shape=jax.ShapeDtypeStruct((B, H, W, C), out_dtype),
        grid=(B, C // TC),
        in_specs=[
            pl.BlockSpec((1, H, W, TC), lambda b, c: (b, 0, 0, c)),
            pl.BlockSpec((k, k, TC), lambda b, c: (0, 0, c)),
            pl.BlockSpec((1, TC), lambda b, c: (0, c)),
        ],
        out_specs=pl.BlockSpec((1, H, W, TC), lambda b, c: (b, 0, 0, c)),
        scratch_shapes=[pltpu.VMEM((1, Hp, Wp, TC), jnp.float32)],
        compiler_params=pltpu.CompilerParams(
            dimension_semantics=("parallel", "parallel"),
            vmem_limit_bytes=vmem_limit,
        ),
        cost_estimate=pl.CostEstimate(
            flops=2 * B * H * W * C * k * k,
            transcendentals=B * H * W * C,
            bytes_accessed=int(xb * B * H * W * C + 4 * (k * k * C + C)
                               + ob * B * H * W * C),
        ),
    )(x, w_kkc.astype(jnp.float32), bias.astype(jnp.float32).reshape(1, C))


# ---------------------------------------------------------------------------
# Full ConvMixer forward (inference-mode BatchNorm)
# ---------------------------------------------------------------------------
def convmixer_forward(x, params, *, patch_size, kernel_size):
    B, Cin, Himg, Wimg = x.shape
    p = patch_size
    assert Himg % p == 0 and Wimg % p == 0
    gh, gw = Himg // p, Wimg // p
    dim = params["pe_w"].shape[0]
    hi = jax.lax.Precision.HIGHEST

    # --- patch embedding: strided conv == patchify + dense projection (bf16) ---
    xp = x.reshape(B, Cin, gh, p, gw, p)
    xp = jnp.transpose(xp, (0, 2, 4, 1, 3, 5)).reshape(B * gh * gw, Cin * p * p)
    w_pe = params["pe_w"].reshape(dim, Cin * p * p).T
    pe_scale, pe_shift = _fold_bn(params["pe_bn"])
    feat = fused_gemm(xp.astype(jnp.bfloat16), w_pe.astype(jnp.bfloat16),
                      params["pe_b"], pe_scale, pe_shift,
                      apply_gelu=True, out_dtype=jnp.float32,
                      allow_input_fusion=True)
    feat = feat.reshape(B, gh, gw, dim)      # channels-last, f32 residual stream

    # --- ConvMixer blocks: x = x + block(x) ---
    # TODO(synk): a further win would fuse each block's depthwise output directly
    # into the pointwise GEMM (single kernel per block) to skip the HBM handoff.
    k = kernel_size
    for blk in params["blocks"]:
        dw_s, dw_t = _fold_bn(blk["dw_bn"])
        w_dw = blk["dw_w"].reshape(dim, k, k).transpose(1, 2, 0)     # (k, k, dim)
        y = depthwise_conv_gelu(feat, w_dw, blk["dw_b"], k,
                                out_dtype=jnp.bfloat16)
        # Fold the depthwise BN affine into the pointwise conv:
        #   (s*g + t) @ W + b  =  g @ (diag(s) W)  +  (b + t @ W)
        w_pw = blk["pw_w"].reshape(dim, dim).T                       # (in, out)
        w_pw_fold = dw_s[:, None] * w_pw
        b_pw_fold = blk["pw_b"] + jnp.dot(dw_t, w_pw, precision=hi)
        pw_s, pw_t = _fold_bn(blk["pw_bn"])
        feat = fused_gemm(y.reshape(B * gh * gw, dim),
                          w_pw_fold.astype(jnp.bfloat16),
                          b_pw_fold, pw_s, pw_t,
                          residual=feat.reshape(B * gh * gw, dim),
                          apply_gelu=True, out_dtype=jnp.float32,
                          allow_input_fusion=True).reshape(B, gh, gw, dim)

    # --- head: global average pool + linear (kept in f32; tiny) ---
    pooled = jnp.mean(feat, axis=(1, 2))                             # (B, dim)
    num_classes = params["head_w"].shape[0]
    logits = fused_gemm(pooled, params["head_w"].T, params["head_b"],
                        jnp.ones((num_classes,), jnp.float32),
                        jnp.zeros((num_classes,), jnp.float32),
                        apply_gelu=False, out_dtype=jnp.float32)
    return logits


# ---------------------------------------------------------------------------
# Pure-JAX f32 reference (same GELU + folded BN), parameter init, self-test
# ---------------------------------------------------------------------------
def convmixer_reference(x, params, *, patch_size, kernel_size):
    prec = jax.lax.Precision.HIGHEST
    dim = params["pe_w"].shape[0]

    def bn_affine(v, bn):
        s, t = _fold_bn(bn)
        return v * s.reshape(1, -1, 1, 1) + t.reshape(1, -1, 1, 1)

    y = jax.lax.conv_general_dilated(
        x, params["pe_w"], (patch_size, patch_size), "VALID",
        dimension_numbers=("NCHW", "OIHW", "NCHW"), precision=prec)
    y = bn_affine(_gelu(y + params["pe_b"].reshape(1, -1, 1, 1)), params["pe_bn"])

    r = (kernel_size - 1) // 2
    for blk in params["blocks"]:
        z = jax.lax.conv_general_dilated(
            y, blk["dw_w"], (1, 1), [(r, r), (r, r)],
            dimension_numbers=("NCHW", "OIHW", "NCHW"),
            feature_group_count=dim, precision=prec)
        z = bn_affine(_gelu(z + blk["dw_b"].reshape(1, -1, 1, 1)), blk["dw_bn"])
        z = jax.lax.conv_general_dilated(
            z, blk["pw_w"], (1, 1), "VALID",
            dimension_numbers=("NCHW", "OIHW", "NCHW"), precision=prec)
        z = bn_affine(_gelu(z + blk["pw_b"].reshape(1, -1, 1, 1)), blk["pw_bn"])
        y = y + z
    pooled = y.mean(axis=(2, 3))
    return jnp.matmul(pooled, params["head_w"].T, precision=prec) + params["head_b"]


def init_params(key, *, dim, depth, kernel_size, patch_size, num_classes, in_ch=3):
    keys = iter(jax.random.split(key, 16 + 16 * depth))

    def nrm(shape, scale=0.05):
        return scale * jax.random.normal(next(keys), shape, dtype=jnp.float32)

    def bn():
        return dict(gamma=1.0 + nrm((dim,), 0.1), beta=nrm((dim,), 0.1),
                    mean=nrm((dim,), 0.1), var=1.0 + jnp.abs(nrm((dim,), 0.1)))

    params = dict(
        pe_w=nrm((dim, in_ch, patch_size, patch_size)),
        pe_b=nrm((dim,)),
        pe_bn=bn(),
        blocks=[],
        head_w=nrm((num_classes, dim)),
        head_b=nrm((num_classes,)),
    )
    for _ in range(depth):
        params["blocks"].append(dict(
            dw_w=nrm((dim, 1, kernel_size, kernel_size)),
            dw_b=nrm((dim,)),
            dw_bn=bn(),
            pw_w=nrm((dim, dim, 1, 1)),
            pw_b=nrm((dim,)),
            pw_bn=bn(),
        ))
    return params


if __name__ == "__main__":
    # Small shapes consistent with the module: Conv2d(3, dim, ...) fixes 3 input
    # channels; dim/depth/kernel/patch scaled down from the defaults.
    B, in_ch, img = 2, 3, 16
    dim, depth, kernel_size, patch_size, num_classes = 32, 2, 3, 4, 16

    key = jax.random.PRNGKey(0)
    kx, kp = jax.random.split(key)
    x = jax.random.normal(kx, (B, in_ch, img, img), dtype=jnp.float32)
    params = init_params(kp, dim=dim, depth=depth, kernel_size=kernel_size,
                         patch_size=patch_size, num_classes=num_classes,
                         in_ch=in_ch)

    fwd = jax.jit(convmixer_forward, static_argnames=("patch_size", "kernel_size"))
    out = fwd(x, params, patch_size=patch_size, kernel_size=kernel_size)
    out = jax.block_until_ready(out)

    ref = convmixer_reference(x, params, patch_size=patch_size,
                              kernel_size=kernel_size)
    ref = jax.block_until_ready(ref)

    assert out.shape == (B, num_classes)
    # Tolerance reflects the bf16 GEMM data path vs. the f32 HIGHEST reference.
    assert jnp.allclose(out, ref, atol=2e-2, rtol=2e-2), (
        float(jnp.max(jnp.abs(out - ref))))
    print("KERNEL_OK")
</pallas_src>

<mosaic_0001>
module attributes {stable_mosaic.version = 11 : i64} {
  func.func @kernel(%arg0: i32, %arg1: memref<16x128xbf16, #tpu.memory_space<vmem>>, %arg2: memref<128x128xbf16, #tpu.memory_space<vmem>>, %arg3: memref<1x128xf32, #tpu.memory_space<vmem>>, %arg4: memref<1x128xf32, #tpu.memory_space<vmem>>, %arg5: memref<1x128xf32, #tpu.memory_space<vmem>>, %arg6: memref<16x128xf32, #tpu.memory_space<vmem>>) attributes {dimension_semantics = [#tpu.dimension_semantics<parallel>], iteration_bounds = array<i64: 2>, scalar_prefetch = 0 : i64, scratch_operands = 0 : i64, tpu.core_type = #tpu.core_type<tc>, window_params = [{transform_indices = @transform_0, window_bounds = array<i64: 16, 128>}, {pipeline_mode = #tpu.pipeline_mode<synchronous>, transform_indices = @transform_1, window_bounds = array<i64: 128, 128>}, {pipeline_mode = #tpu.pipeline_mode<synchronous>, transform_indices = @transform_2, window_bounds = array<i64: 1, 128>}, {pipeline_mode = #tpu.pipeline_mode<synchronous>, transform_indices = @transform_3, window_bounds = array<i64: 1, 128>}, {pipeline_mode = #tpu.pipeline_mode<synchronous>, transform_indices = @transform_4, window_bounds = array<i64: 1, 128>}, {transform_indices = @transform_5, window_bounds = array<i64: 16, 128>}]} {
    %c0 = arith.constant 0 : index
    %c0_0 = arith.constant 0 : index
    %0 = vector.load %arg1[%c0, %c0_0] : memref<16x128xbf16, #tpu.memory_space<vmem>>, vector<16x128xbf16>
    %c0_1 = arith.constant 0 : index
    %c0_2 = arith.constant 0 : index
    %1 = vector.load %arg2[%c0_1, %c0_2] : memref<128x128xbf16, #tpu.memory_space<vmem>>, vector<128x128xbf16>
    %cst = arith.constant dense<0.000000e+00> : vector<16x128xf32>
    %2 = tpu.matmul %0, %1, %cst {dimension_numbers = #tpu.dot_dimension_numbers<[1], [0], [0], [1], [0, 0, 1, 1], [], []>} : vector<16x128xbf16>, vector<128x128xbf16>, vector<16x128xf32> -> vector<16x128xf32>
    %c0_3 = arith.constant 0 : index
    %c0_4 = arith.constant 0 : index
    %3 = vector.load %arg3[%c0_3, %c0_4] : memref<1x128xf32, #tpu.memory_space<vmem>>, vector<1x128xf32>
    %4 = vector.broadcast %3 : vector<1x128xf32> to vector<16x128xf32>
    %5 = arith.addf %2, %4 : vector<16x128xf32>
    %cst_5 = arith.constant 5.000000e-01 : f32
    %6 = vector.broadcast %cst_5 : f32 to vector<16x128xf32>
    %7 = arith.mulf %6, %5 : vector<16x128xf32>
    %cst_6 = arith.constant 4.471500e-02 : f32
    %8 = vector.broadcast %cst_6 : f32 to vector<16x128xf32>
    %9 = arith.mulf %8, %5 : vector<16x128xf32>
    %10 = arith.mulf %9, %5 : vector<16x128xf32>
    %11 = arith.mulf %10, %5 : vector<16x128xf32>
    %12 = arith.addf %5, %11 : vector<16x128xf32>
    %cst_7 = arith.constant 0.797884583 : f32
    %13 = vector.broadcast %cst_7 : f32 to vector<16x128xf32>
    %14 = arith.mulf %13, %12 : vector<16x128xf32>
    %15 = math.tanh %14 : vector<16x128xf32>
    %cst_8 = arith.constant 1.000000e+00 : f32
    %16 = vector.broadcast %cst_8 : f32 to vector<16x128xf32>
    %17 = arith.addf %16, %15 : vector<16x128xf32>
    %18 = arith.mulf %7, %17 : vector<16x128xf32>
    %c0_9 = arith.constant 0 : index
    %c0_10 = arith.constant 0 : index
    %19 = vector.load %arg4[%c0_9, %c0_10] : memref<1x128xf32, #tpu.memory_space<vmem>>, vector<1x128xf32>
    %20 = vector.broadcast %19 : vector<1x128xf32> to vector<16x128xf32>
    %21 = arith.mulf %18, %20 : vector<16x128xf32>
    %c0_11 = arith.constant 0 : index
    %c0_12 = arith.constant 0 : index
    %22 = vector.load %arg5[%c0_11, %c0_12] : memref<1x128xf32, #tpu.memory_space<vmem>>, vector<1x128xf32>
    %23 = vector.broadcast %22 : vector<1x128xf32> to vector<16x128xf32>
    %24 = arith.addf %21, %23 : vector<16x128xf32>
    %c0_13 = arith.constant 0 : index
    %c0_14 = arith.constant 0 : index
    %25 = vector.load %arg6[%c0_13, %c0_14] : memref<16x128xf32, #tpu.memory_space<vmem>>, vector<16x128xf32>
    tpu.vector_store %arg6[%c0_13, %c0_14], %24 {strides = array<i32>} : memref<16x128xf32, #tpu.memory_space<vmem>>, vector<16x128xf32>,
    return
  }
  func.func @transform_0(%arg0: i32) -> (i32, i32) {
    %c0_i32 = arith.constant 0 : i32
    %c0_i32_0 = arith.constant 0 : i32
    return %arg0, %c0_i32 : i32, i32
  }
  func.func @transform_1(%arg0: i32) -> (i32, i32) {
    %c0_i32 = arith.constant 0 : i32
    %c0_i32_0 = arith.constant 0 : i32
    %c0_i32_1 = arith.constant 0 : i32
    return %c0_i32, %c0_i32_0 : i32, i32
  }
  func.func @transform_2(%arg0: i32) -> (i32, i32) {
    %c0_i32 = arith.constant 0 : i32
    %c0_i32_0 = arith.constant 0 : i32
    %c0_i32_1 = arith.constant 0 : i32
    return %c0_i32, %c0_i32_0 : i32, i32
  }
  func.func @transform_3(%arg0: i32) -> (i32, i32) {
    %c0_i32 = arith.constant 0 : i32
    %c0_i32_0 = arith.constant 0 : i32
    %c0_i32_1 = arith.constant 0 : i32
    return %c0_i32, %c0_i32_0 : i32, i32
  }
  func.func @transform_4(%arg0: i32) -> (i32, i32) {
    %c0_i32 = arith.constant 0 : i32
    %c0_i32_0 = arith.constant 0 : i32
    %c0_i32_1 = arith.constant 0 : i32
    return %c0_i32, %c0_i32_0 : i32, i32
  }
  func.func @transform_5(%arg0: i32) -> (i32, i32) {
    %c0_i32 = arith.constant 0 : i32
    %c0_i32_0 = arith.constant 0 : i32
    return %arg0, %c0_i32 : i32, i32
  }
}

module attributes {stable_mosaic.version = 11 : i64} {
  func.func @kernel(%arg0: i32, %arg1: i32, %arg2: memref<1x4x4x32xf32, #tpu.memory_space<vmem>>, %arg3: memref<3x3x32xf32, #tpu.memory_space<vmem>>, %arg4: memref<1x32xf32, #tpu.memory_space<vmem>>, %arg5: memref<1x4x4x32xbf16, #tpu.memory_space<vmem>>, %arg6: memref<1x6x6x32xf32, #tpu.memory_space<vmem>>) attributes {dimension_semantics = [#tpu.dimension_semantics<parallel>, #tpu.dimension_semantics<parallel>], iteration_bounds = array<i64: 2, 1>, scalar_prefetch = 0 : i64, scratch_operands = 1 : i64, tpu.core_type = #tpu.core_type<tc>, window_params = [{transform_indices = @transform_0, window_bounds = array<i64: 1, 4, 4, 32>}, {transform_indices = @transform_1, window_bounds = array<i64: 3, 3, 32>}, {transform_indices = @transform_2, window_bounds = array<i64: 1, 32>}, {transform_indices = @transform_3, window_bounds = array<i64: 1, 4, 4, 32>}]} {
    %cst = arith.constant 0.000000e+00 : f32
    %0 = vector.broadcast %cst : f32 to vector<1x6x6x32xf32>
    %c0 = arith.constant 0 : index
    %c0_0 = arith.constant 0 : index
    %c0_1 = arith.constant 0 : index
    %c0_2 = arith.constant 0 : index
    %1 = vector.load %arg6[%c0, %c0_0, %c0_1, %c0_2] : memref<1x6x6x32xf32, #tpu.memory_space<vmem>>, vector<1x6x6x32xf32>
    tpu.vector_store %arg6[%c0, %c0_0, %c0_1, %c0_2], %0 {strides = array<i32>} : memref<1x6x6x32xf32, #tpu.memory_space<vmem>>, vector<1x6x6x32xf32>,
    %c0_3 = arith.constant 0 : index
    %c0_4 = arith.constant 0 : index
    %c0_5 = arith.constant 0 : index
    %c0_6 = arith.constant 0 : index
    %2 = vector.load %arg2[%c0_3, %c0_4, %c0_5, %c0_6] : memref<1x4x4x32xf32, #tpu.memory_space<vmem>>, vector<1x4x4x32xf32>
    %c0_7 = arith.constant 0 : index
    %c1 = arith.constant 1 : index
    %c1_8 = arith.constant 1 : index
    %c0_9 = arith.constant 0 : index
    %3 = vector.load %arg6[%c0_7, %c1, %c1_8, %c0_9] : memref<1x6x6x32xf32, #tpu.memory_space<vmem>>, vector<1x4x4x32xf32>
    tpu.vector_store %arg6[%c0_7, %c1, %c1_8, %c0_9], %2 {strides = array<i32>} : memref<1x6x6x32xf32, #tpu.memory_space<vmem>>, vector<1x4x4x32xf32>,
    %c0_10 = arith.constant 0 : index
    %c0_11 = arith.constant 0 : index
    %c0_12 = arith.constant 0 : index
    %4 = vector.load %arg3[%c0_10, %c0_11, %c0_12] : memref<3x3x32xf32, #tpu.memory_space<vmem>>, vector<3x3x32xf32>
    %cst_13 = arith.constant 0.000000e+00 : f32
    %5 = vector.broadcast %cst_13 : f32 to vector<1x4x4x32xf32>
    %c0_14 = arith.constant 0 : index
    %c0_15 = arith.constant 0 : index
    %c0_16 = arith.constant 0 : index
    %c0_17 = arith.constant 0 : index
    %6 = vector.load %arg6[%c0_14, %c0_15, %c0_16, %c0_17] : memref<1x6x6x32xf32, #tpu.memory_space<vmem>>, vector<1x6x4x32xf32>
    %7 = vector.extract_strided_slice %6 {offsets = [0, 0, 0, 0], sizes = [1, 4, 4, 32], strides = [1, 1, 1, 1]} : vector<1x6x4x32xf32> to vector<1x4x4x32xf32>
    %8 = vector.extract_strided_slice %4 {offsets = [0, 0, 0], sizes = [1, 1, 32], strides = [1, 1, 1]} : vector<3x3x32xf32> to vector<1x1x32xf32>
    %9 = vector.shape_cast %8 : vector<1x1x32xf32> to vector<32xf32>
    %10 = vector.shape_cast %9 : vector<32xf32> to vector<1x1x1x32xf32>
    %11 = vector.broadcast %10 : vector<1x1x1x32xf32> to vector<1x4x4x32xf32>
    %12 = arith.mulf %7, %11 : vector<1x4x4x32xf32>
    %13 = arith.addf %5, %12 : vector<1x4x4x32xf32>
    %14 = vector.extract_strided_slice %6 {offsets = [0, 1, 0, 0], sizes = [1, 4, 4, 32], strides = [1, 1, 1, 1]} : vector<1x6x4x32xf32> to vector<1x4x4x32xf32>
    %15 = vector.extract_strided_slice %4 {offsets = [1, 0, 0], sizes = [1, 1, 32], strides = [1, 1, 1]} : vector<3x3x32xf32> to vector<1x1x32xf32>
    %16 = vector.shape_cast %15 : vector<1x1x32xf32> to vector<32xf32>
    %17 = vector.shape_cast %16 : vector<32xf32> to vector<1x1x1x32xf32>
    %18 = vector.broadcast %17 : vector<1x1x1x32xf32> to vector<1x4x4x32xf32>
    %19 = arith.mulf %14, %18 : vector<1x4x4x32xf32>
    %20 = arith.addf %13, %19 : vector<1x4x4x32xf32>
    %21 = vector.extract_strided_slice %6 {offsets = [0, 2, 0, 0], sizes = [1, 4, 4, 32], strides = [1, 1, 1, 1]} : vector<1x6x4x32xf32> to vector<1x4x4x32xf32>
    %22 = vector.extract_strided_slice %4 {offsets = [2, 0, 0], sizes = [1, 1, 32], strides = [1, 1, 1]} : vector<3x3x32xf32> to vector<1x1x32xf32>
    %23 = vector.shape_cast %22 : vector<1x1x32xf32> to vector<32xf32>
    %24 = vector.shape_cast %23 : vector<32xf32> to vector<1x1x1x32xf32>
    %25 = vector.broadcast %24 : vector<1x1x1x32xf32> to vector<1x4x4x32xf32>
    %26 = arith.mulf %21, %25 : vector<1x4x4x32xf32>
    %27 = arith.addf %20, %26 : vector<1x4x4x32xf32>
    %c0_18 = arith.constant 0 : index
    %c0_19 = arith.constant 0 : index
    %c1_20 = arith.constant 1 : index
    %c0_21 = arith.constant 0 : index
    %28 = vector.load %arg6[%c0_18, %c0_19, %c1_20, %c0_21] : memref<1x6x6x32xf32, #tpu.memory_space<vmem>>, vector<1x6x4x32xf32>
    %29 = vector.extract_strided_slice %28 {offsets = [0, 0, 0, 0], sizes = [1, 4, 4, 32], strides = [1, 1, 1, 1]} : vector<1x6x4x32xf32> to vector<1x4x4x32xf32>
    %30 = vector.extract_strided_slice %4 {offsets = [0, 1, 0], sizes = [1, 1, 32], strides = [1, 1, 1]} : vector<3x3x32xf32> to vector<1x1x32xf32>
    %31 = vector.shape_cast %30 : vector<1x1x32xf32> to vector<32xf32>
    %32 = vector.shape_cast %31 : vector<32xf32> to vector<1x1x1x32xf32>
    %33 = vector.broadcast %32 : vector<1x1x1x32xf32> to vector<1x4x4x32xf32>
    %34 = arith.mulf %29, %33 : vector<1x4x4x32xf32>
    %35 = arith.addf %27, %34 : vector<1x4x4x32xf32>
    %36 = vector.extract_strided_slice %28 {offsets = [0, 1, 0, 0], sizes = [1, 4, 4, 32], strides = [1, 1, 1, 1]} : vector<1x6x4x32xf32> to vector<1x4x4x32xf32>
    %37 = vector.extract_strided_slice %4 {offsets = [1, 1, 0], sizes = [1, 1, 32], strides = [1, 1, 1]} : vector<3x3x32xf32> to vector<1x1x32xf32>
    %38 = vector.shape_cast %37 : vector<1x1x32xf32> to vector<32xf32>
    %39 = vector.shape_cast %38 : vector<32xf32> to vector<1x1x1x32xf32>
    %40 = vector.broadcast %39 : vector<1x1x1x32xf32> to vector<1x4x4x32xf32>
    %41 = arith.mulf %36, %40 : vector<1x4x4x32xf32>
    %42 = arith.addf %35, %41 : vector<1x4x4x32xf32>
    %43 = vector.extract_strided_slice %28 {offsets = [0, 2, 0, 0], sizes = [1, 4, 4, 32], strides = [1, 1, 1, 1]} : vector<1x6x4x32xf32> to vector<1x4x4x32xf32>
    %44 = vector.extract_strided_slice %4 {offsets = [2, 1, 0], sizes = [1, 1, 32], strides = [1, 1, 1]} : vector<3x3x32xf32> to vector<1x1x32xf32>
    %45 = vector.shape_cast %44 : vector<1x1x32xf32> to vector<32xf32>
    %46 = vector.shape_cast %45 : vector<32xf32> to vector<1x1x1x32xf32>
    %47 = vector.broadcast %46 : vector<1x1x1x32xf32> to vector<1x4x4x32xf32>
    %48 = arith.mulf %43, %47 : vector<1x4x4x32xf32>
    %49 = arith.addf %42, %48 : vector<1x4x4x32xf32>
    %c0_22 = arith.constant 0 : index
    %c0_23 = arith.constant 0 : index
    %c2 = arith.constant 2 : index
    %c0_24 = arith.constant 0 : index
    %50 = vector.load %arg6[%c0_22, %c0_23, %c2, %c0_24] : memref<1x6x6x32xf32, #tpu.memory_space<vmem>>, vector<1x6x4x32xf32>
    %51 = vector.extract_strided_slice %50 {offsets = [0, 0, 0, 0], sizes = [1, 4, 4, 32], strides = [1, 1, 1, 1]} : vector<1x6x4x32xf32> to vector<1x4x4x32xf32>
    %52 = vector.extract_strided_slice %4 {offsets = [0, 2, 0], sizes = [1, 1, 32], strides = [1, 1, 1]} : vector<3x3x32xf32> to vector<1x1x32xf32>
    %53 = vector.shape_cast %52 : vector<1x1x32xf32> to vector<32xf32>
    %54 = vector.shape_cast %53 : vector<32xf32> to vector<1x1x1x32xf32>
    %55 = vector.broadcast %54 : vector<1x1x1x32xf32> to vector<1x4x4x32xf32>
    %56 = arith.mulf %51, %55 : vector<1x4x4x32xf32>
    %57 = arith.addf %49, %56 : vector<1x4x4x32xf32>
    %58 = vector.extract_strided_slice %50 {offsets = [0, 1, 0, 0], sizes = [1, 4, 4, 32], strides = [1, 1, 1, 1]} : vector<1x6x4x32xf32> to vector<1x4x4x32xf32>
    %59 = vector.extract_strided_slice %4 {offsets = [1, 2, 0], sizes = [1, 1, 32], strides = [1, 1, 1]} : vector<3x3x32xf32> to vector<1x1x32xf32>
    %60 = vector.shape_cast %59 : vector<1x1x32xf32> to vector<32xf32>
    %61 = vector.shape_cast %60 : vector<32xf32> to vector<1x1x1x32xf32>
    %62 = vector.broadcast %61 : vector<1x1x1x32xf32> to vector<1x4x4x32xf32>
    %63 = arith.mulf %58, %62 : vector<1x4x4x32xf32>
    %64 = arith.addf %57, %63 : vector<1x4x4x32xf32>
    %65 = vector.extract_strided_slice %50 {offsets = [0, 2, 0, 0], sizes = [1, 4, 4, 32], strides = [1, 1, 1, 1]} : vector<1x6x4x32xf32> to vector<1x4x4x32xf32>
    %66 = vector.extract_strided_slice %4 {offsets = [2, 2, 0], sizes = [1, 1, 32], strides = [1, 1, 1]} : vector<3x3x32xf32> to vector<1x1x32xf32>
    %67 = vector.shape_cast %66 : vector<1x1x32xf32> to vector<32xf32>
    %68 = vector.shape_cast %67 : vector<32xf32> to vector<1x1x1x32xf32>
    %69 = vector.broadcast %68 : vector<1x1x1x32xf32> to vector<1x4x4x32xf32>
    %70 = arith.mulf %65, %69 : vector<1x4x4x32xf32>
    %71 = arith.addf %64, %70 : vector<1x4x4x32xf32>
    %c0_25 = arith.constant 0 : index
    %c0_26 = arith.constant 0 : index
    %72 = vector.load %arg4[%c0_25, %c0_26] : memref<1x32xf32, #tpu.memory_space<vmem>>, vector<1x32xf32>
    %73 = vector.shape_cast %72 : vector<1x32xf32> to vector<1x1x1x32xf32>
    %74 = vector.broadcast %73 : vector<1x1x1x32xf32> to vector<1x4x4x32xf32>
    %75 = arith.addf %71, %74 : vector<1x4x4x32xf32>
    %cst_27 = arith.constant 5.000000e-01 : f32
    %76 = vector.broadcast %cst_27 : f32 to vector<1x4x4x32xf32>
    %77 = arith.mulf %76, %75 : vector<1x4x4x32xf32>
    %cst_28 = arith.constant 4.471500e-02 : f32
    %78 = vector.broadcast %cst_28 : f32 to vector<1x4x4x32xf32>
    %79 = arith.mulf %78, %75 : vector<1x4x4x32xf32>
    %80 = arith.mulf %79, %75 : vector<1x4x4x32xf32>
    %81 = arith.mulf %80, %75 : vector<1x4x4x32xf32>
    %82 = arith.addf %75, %81 : vector<1x4x4x32xf32>
    %cst_29 = arith.constant 0.797884583 : f32
    %83 = vector.broadcast %cst_29 : f32 to vector<1x4x4x32xf32>
    %84 = arith.mulf %83, %82 : vector<1x4x4x32xf32>
    %85 = math.tanh %84 : vector<1x4x4x32xf32>
    %cst_30 = arith.constant 1.000000e+00 : f32
    %86 = vector.broadcast %cst_30 : f32 to vector<1x4x4x32xf32>
    %87 = arith.addf %86, %85 : vector<1x4x4x32xf32>
    %88 = arith.mulf %77, %87 : vector<1x4x4x32xf32>
    %89 = arith.truncf %88 : vector<1x4x4x32xf32> to vector<1x4x4x32xbf16>
    %c0_31 = arith.constant 0 : index
    %c0_32 = arith.constant 0 : index
    %c0_33 = arith.constant 0 : index
    %c0_34 = arith.constant 0 : index
    %90 = vector.load %arg5[%c0_31, %c0_32, %c0_33, %c0_34] : memref<1x4x4x32xbf16, #tpu.memory_space<vmem>>, vector<1x4x4x32xbf16>
    tpu.vector_store %arg5[%c0_31, %c0_32, %c0_33, %c0_34], %89 {strides = array<i32>} : memref<1x4x4x32xbf16, #tpu.memory_space<vmem>>, vector<1x4x4x32xbf16>,
    return
  }
  func.func @transform_0(%arg0: i32, %arg1: i32) -> (i32, i32, i32, i32) {
    %c0_i32 = arith.constant 0 : i32
    %c0_i32_0 = arith.constant 0 : i32
    %c0_i32_1 = arith.constant 0 : i32
    return %arg0, %c0_i32, %c0_i32_0, %arg1 : i32, i32, i32, i32
  }
  func.func @transform_1(%arg0: i32, %arg1: i32) -> (i32, i32, i32) {
    %c0_i32 = arith.constant 0 : i32
    %c0_i32_0 = arith.constant 0 : i32
    %c0_i32_1 = arith.constant 0 : i32
    return %c0_i32, %c0_i32_0, %arg1 : i32, i32, i32
  }
  func.func @transform_2(%arg0: i32, %arg1: i32) -> (i32, i32) {
    %c0_i32 = arith.constant 0 : i32
    %c0_i32_0 = arith.constant 0 : i32
    return %c0_i32, %arg1 : i32, i32
  }
  func.func @transform_3(%arg0: i32, %arg1: i32) -> (i32, i32, i32, i32) {
    %c0_i32 = arith.constant 0 : i32
    %c0_i32_0 = arith.constant 0 : i32
    %c0_i32_1 = arith.constant 0 : i32
    return %arg0, %c0_i32, %c0_i32_0, %arg1 : i32, i32, i32, i32
  }
}

module attributes {stable_mosaic.version = 11 : i64} {
  func.func @kernel(%arg0: i32, %arg1: memref<16x128xbf16, #tpu.memory_space<vmem>>, %arg2: memref<128x128xbf16, #tpu.memory_space<vmem>>, %arg3: memref<1x128xf32, #tpu.memory_space<vmem>>, %arg4: memref<1x128xf32, #tpu.memory_space<vmem>>, %arg5: memref<1x128xf32, #tpu.memory_space<vmem>>, %arg6: memref<16x128xf32, #tpu.memory_space<vmem>>, %arg7: memref<16x128xf32, #tpu.memory_space<vmem>>) attributes {dimension_semantics = [#tpu.dimension_semantics<parallel>], iteration_bounds = array<i64: 2>, scalar_prefetch = 0 : i64, scratch_operands = 0 : i64, tpu.core_type = #tpu.core_type<tc>, window_params = [{transform_indices = @transform_0, window_bounds = array<i64: 16, 128>}, {pipeline_mode = #tpu.pipeline_mode<synchronous>, transform_indices = @transform_1, window_bounds = array<i64: 128, 128>}, {pipeline_mode = #tpu.pipeline_mode<synchronous>, transform_indices = @transform_2, window_bounds = array<i64: 1, 128>}, {pipeline_mode = #tpu.pipeline_mode<synchronous>, transform_indices = @transform_3, window_bounds = array<i64: 1, 128>}, {pipeline_mode = #tpu.pipeline_mode<synchronous>, transform_indices = @transform_4, window_bounds = array<i64: 1, 128>}, {transform_indices = @transform_5, window_bounds = array<i64: 16, 128>}, {transform_indices = @transform_6, window_bounds = array<i64: 16, 128>}]} {
    %c0 = arith.constant 0 : index
    %c0_0 = arith.constant 0 : index
    %0 = vector.load %arg1[%c0, %c0_0] : memref<16x128xbf16, #tpu.memory_space<vmem>>, vector<16x128xbf16>
    %c0_1 = arith.constant 0 : index
    %c0_2 = arith.constant 0 : index
    %1 = vector.load %arg2[%c0_1, %c0_2] : memref<128x128xbf16, #tpu.memory_space<vmem>>, vector<128x128xbf16>
    %cst = arith.constant dense<0.000000e+00> : vector<16x128xf32>
    %2 = tpu.matmul %0, %1, %cst {dimension_numbers = #tpu.dot_dimension_numbers<[1], [0], [0], [1], [0, 0, 1, 1], [], []>} : vector<16x128xbf16>, vector<128x128xbf16>, vector<16x128xf32> -> vector<16x128xf32>
    %c0_3 = arith.constant 0 : index
    %c0_4 = arith.constant 0 : index
    %3 = vector.load %arg3[%c0_3, %c0_4] : memref<1x128xf32, #tpu.memory_space<vmem>>, vector<1x128xf32>
    %4 = vector.broadcast %3 : vector<1x128xf32> to vector<16x128xf32>
    %5 = arith.addf %2, %4 : vector<16x128xf32>
    %cst_5 = arith.constant 5.000000e-01 : f32
    %6 = vector.broadcast %cst_5 : f32 to vector<16x128xf32>
    %7 = arith.mulf %6, %5 : vector<16x128xf32>
    %cst_6 = arith.constant 4.471500e-02 : f32
    %8 = vector.broadcast %cst_6 : f32 to vector<16x128xf32>
    %9 = arith.mulf %8, %5 : vector<16x128xf32>
    %10 = arith.mulf %9, %5 : vector<16x128xf32>
    %11 = arith.mulf %10, %5 : vector<16x128xf32>
    %12 = arith.addf %5, %11 : vector<16x128xf32>
    %cst_7 = arith.constant 0.797884583 : f32
    %13 = vector.broadcast %cst_7 : f32 to vector<16x128xf32>
    %14 = arith.mulf %13, %12 : vector<16x128xf32>
    %15 = math.tanh %14 : vector<16x128xf32>
    %cst_8 = arith.constant 1.000000e+00 : f32
    %16 = vector.broadcast %cst_8 : f32 to vector<16x128xf32>
    %17 = arith.addf %16, %15 : vector<16x128xf32>
    %18 = arith.mulf %7, %17 : vector<16x128xf32>
    %c0_9 = arith.constant 0 : index
    %c0_10 = arith.constant 0 : index
    %19 = vector.load %arg4[%c0_9, %c0_10] : memref<1x128xf32, #tpu.memory_space<vmem>>, vector<1x128xf32>
    %20 = vector.broadcast %19 : vector<1x128xf32> to vector<16x128xf32>
    %21 = arith.mulf %18, %20 : vector<16x128xf32>
    %c0_11 = arith.constant 0 : index
    %c0_12 = arith.constant 0 : index
    %22 = vector.load %arg5[%c0_11, %c0_12] : memref<1x128xf32, #tpu.memory_space<vmem>>, vector<1x128xf32>
    %23 = vector.broadcast %22 : vector<1x128xf32> to vector<16x128xf32>
    %24 = arith.addf %21, %23 : vector<16x128xf32>
    %c0_13 = arith.constant 0 : index
    %c0_14 = arith.constant 0 : index
    %25 = vector.load %arg6[%c0_13, %c0_14] : memref<16x128xf32, #tpu.memory_space<vmem>>, vector<16x128xf32>
    %26 = arith.addf %24, %25 : vector<16x128xf32>
    %c0_15 = arith.constant 0 : index
    %c0_16 = arith.constant 0 : index
    %27 = vector.load %arg7[%c0_15, %c0_16] : memref<16x128xf32, #tpu.memory_space<vmem>>, vector<16x128xf32>
    tpu.vector_store %arg7[%c0_15, %c0_16], %26 {strides = array<i32>} : memref<16x128xf32, #tpu.memory_space<vmem>>, vector<16x128xf32>,
    return
  }
  func.func @transform_0(%arg0: i32) -> (i32, i32) {
    %c0_i32 = arith.constant 0 : i32
    %c0_i32_0 = arith.constant 0 : i32
    return %arg0, %c0_i32 : i32, i32
  }
  func.func @transform_1(%arg0: i32) -> (i32, i32) {
    %c0_i32 = arith.constant 0 : i32
    %c0_i32_0 = arith.constant 0 : i32
    %c0_i32_1 = arith.constant 0 : i32
    return %c0_i32, %c0_i32_0 : i32, i32
  }
  func.func @transform_2(%arg0: i32) -> (i32, i32) {
    %c0_i32 = arith.constant 0 : i32
    %c0_i32_0 = arith.constant 0 : i32
    %c0_i32_1 = arith.constant 0 : i32
    return %c0_i32, %c0_i32_0 : i32, i32
  }
  func.func @transform_3(%arg0: i32) -> (i32, i32) {
    %c0_i32 = arith.constant 0 : i32
    %c0_i32_0 = arith.constant 0 : i32
    %c0_i32_1 = arith.constant 0 : i32
    return %c0_i32, %c0_i32_0 : i32, i32
  }
  func.func @transform_4(%arg0: i32) -> (i32, i32) {
    %c0_i32 = arith.constant 0 : i32
    %c0_i32_0 = arith.constant 0 : i32
    %c0_i32_1 = arith.constant 0 : i32
    return %c0_i32, %c0_i32_0 : i32, i32
  }
  func.func @transform_5(%arg0: i32) -> (i32, i32) {
    %c0_i32 = arith.constant 0 : i32
    %c0_i32_0 = arith.constant 0 : i32
    return %arg0, %c0_i32 : i32, i32
  }
  func.func @transform_6(%arg0: i32) -> (i32, i32) {
    %c0_i32 = arith.constant 0 : i32
    %c0_i32_0 = arith.constant 0 : i32
    return %arg0, %c0_i32 : i32, i32
  }
}

module attributes {stable_mosaic.version = 11 : i64} {
  func.func @kernel(%arg0: i32, %arg1: memref<8x128xf32, #tpu.memory_space<vmem>>, %arg2: memref<128x128xf32, #tpu.memory_space<vmem>>, %arg3: memref<1x128xf32, #tpu.memory_space<vmem>>, %arg4: memref<1x128xf32, #tpu.memory_space<vmem>>, %arg5: memref<1x128xf32, #tpu.memory_space<vmem>>, %arg6: memref<8x128xf32, #tpu.memory_space<vmem>>) attributes {dimension_semantics = [#tpu.dimension_semantics<parallel>], iteration_bounds = array<i64: 1>, scalar_prefetch = 0 : i64, scratch_operands = 0 : i64, tpu.core_type = #tpu.core_type<tc>, window_params = [{transform_indices = @transform_0, window_bounds = array<i64: 8, 128>}, {pipeline_mode = #tpu.pipeline_mode<synchronous>, transform_indices = @transform_1, window_bounds = array<i64: 128, 128>}, {pipeline_mode = #tpu.pipeline_mode<synchronous>, transform_indices = @transform_2, window_bounds = array<i64: 1, 128>}, {pipeline_mode = #tpu.pipeline_mode<synchronous>, transform_indices = @transform_3, window_bounds = array<i64: 1, 128>}, {pipeline_mode = #tpu.pipeline_mode<synchronous>, transform_indices = @transform_4, window_bounds = array<i64: 1, 128>}, {transform_indices = @transform_5, window_bounds = array<i64: 8, 128>}]} {
    %c0 = arith.constant 0 : index
    %c0_0 = arith.constant 0 : index
    %0 = vector.load %arg1[%c0, %c0_0] : memref<8x128xf32, #tpu.memory_space<vmem>>, vector<8x128xf32>
    %c0_1 = arith.constant 0 : index
    %c0_2 = arith.constant 0 : index
    %1 = vector.load %arg2[%c0_1, %c0_2] : memref<128x128xf32, #tpu.memory_space<vmem>>, vector<128x128xf32>
    %cst = arith.constant dense<0.000000e+00> : vector<8x128xf32>
    %2 = tpu.matmul %0, %1, %cst {dimension_numbers = #tpu.dot_dimension_numbers<[1], [0], [0], [1], [0, 0, 1, 1], [], []>} : vector<8x128xf32>, vector<128x128xf32>, vector<8x128xf32> -> vector<8x128xf32>
    %c0_3 = arith.constant 0 : index
    %c0_4 = arith.constant 0 : index
    %3 = vector.load %arg3[%c0_3, %c0_4] : memref<1x128xf32, #tpu.memory_space<vmem>>, vector<1x128xf32>
    %4 = vector.broadcast %3 : vector<1x128xf32> to vector<8x128xf32>
    %5 = arith.addf %2, %4 : vector<8x128xf32>
    %c0_5 = arith.constant 0 : index
    %c0_6 = arith.constant 0 : index
    %6 = vector.load %arg4[%c0_5, %c0_6] : memref<1x128xf32, #tpu.memory_space<vmem>>, vector<1x128xf32>
    %7 = vector.broadcast %6 : vector<1x128xf32> to vector<8x128xf32>
    %8 = arith.mulf %5, %7 : vector<8x128xf32>
    %c0_7 = arith.constant 0 : index
    %c0_8 = arith.constant 0 : index
    %9 = vector.load %arg5[%c0_7, %c0_8] : memref<1x128xf32, #tpu.memory_space<vmem>>, vector<1x128xf32>
    %10 = vector.broadcast %9 : vector<1x128xf32> to vector<8x128xf32>
    %11 = arith.addf %8, %10 : vector<8x128xf32>
    %c0_9 = arith.constant 0 : index
    %c0_10 = arith.constant 0 : index
    %12 = vector.load %arg6[%c0_9, %c0_10] : memref<8x128xf32, #tpu.memory_space<vmem>>, vector<8x128xf32>
    tpu.vector_store %arg6[%c0_9, %c0_10], %11 {strides = array<i32>} : memref<8x128xf32, #tpu.memory_space<vmem>>, vector<8x128xf32>,
    return
  }
  func.func @transform_0(%arg0: i32) -> (i32, i32) {
    %c0_i32 = arith.constant 0 : i32
    %c0_i32_0 = arith.constant 0 : i32
    return %arg0, %c0_i32 : i32, i32
  }
  func.func @transform_1(%arg0: i32) -> (i32, i32) {
    %c0_i32 = arith.constant 0 : i32
    %c0_i32_0 = arith.constant 0 : i32
    %c0_i32_1 = arith.constant 0 : i32
    return %c0_i32, %c0_i32_0 : i32, i32
  }
  func.func @transform_2(%arg0: i32) -> (i32, i32) {
    %c0_i32 = arith.constant 0 : i32
    %c0_i32_0 = arith.constant 0 : i32
    %c0_i32_1 = arith.constant 0 : i32
    return %c0_i32, %c0_i32_0 : i32, i32
  }
  func.func @transform_3(%arg0: i32) -> (i32, i32) {
    %c0_i32 = arith.constant 0 : i32
    %c0_i32_0 = arith.constant 0 : i32
    %c0_i32_1 = arith.constant 0 : i32
    return %c0_i32, %c0_i32_0 : i32, i32
  }
  func.func @transform_4(%arg0: i32) -> (i32, i32) {
    %c0_i32 = arith.constant 0 : i32
    %c0_i32_0 = arith.constant 0 : i32
    %c0_i32_1 = arith.constant 0 : i32
    return %c0_i32, %c0_i32_0 : i32, i32
  }
  func.func @transform_5(%arg0: i32) -> (i32, i32) {
    %c0_i32 = arith.constant 0 : i32
    %c0_i32_0 = arith.constant 0 : i32
    return %arg0, %c0_i32 : i32, i32
  }
}

</mosaic_0001>

<bundles_post_ra>
// kernel: convmixer_forward.14
= control target key start
LH: loop header
LB: loop body
LE: loop exit
PB: predicated region body
PF: predicated region fallthrough
CT: control target
= control target key end

     0   :  { %s619_s23 = smov 0   ;;  %s675_s0 = inlined_call_operand.vmem [shape: bf16[128,128], index: 0, kind: input, shape index: {}]   ;;  %s676_s1 = inlined_call_operand.vmem [shape: f32[1,128], index: 1, kind: input, shape index: {}]   ;;  %s677_s2 = inlined_call_operand.vmem [shape: f32[1,128], index: 2, kind: input, shape index: {}]   ;;  %s678_s3 = inlined_call_operand.vmem [shape: f32[1,128], index: 3, kind: input, shape index: {}]   ;;  %s679_s4 = inlined_call_operand.vmem [shape: bf16[32,48], index: 4, kind: input, shape index: {}]   ;;  %s680_s5 = inlined_call_operand.<no memory space> [shape: bf16[], index: 5, kind: input, shape index: {}]   ;;  %s681_s6 = inlined_call_operand.vmem [shape: f32[32,128], index: 6, kind: output, shape index: {}]  }
   0x1   :  { %v11_v0 = vstv %s680_s5 }
   0x2   :  { %v617_v1 = vunpack.i.l.bf16 %v11_v0 }
   0x3 LB: > { %s493_s24 = sadd.s32 4294967295, %s575_s23   ;;  %p497_p0 = scmp.ge.s32.totalorder %s575_s23, 1  ;;  %s575_s23 = sphi %s619_s23, %s21_s23  }
   0x4   : > { %p194_p1 = scmp.lt.s32.totalorder %s575_s23, 3 }
   0x6   : > { %p195_p2 = pnand %p497_p0, %p194_p1 }
   0x8   : > { %198 = sbr.rel (%p195_p2) target bundleno = 278 (0x116), region = 40 }
   0xd   : > { %v556_v2 = vld [vmem:[%s675_s0 + $0x38] sm:$0xff]   ;;  %v577_v3 = vmov 0.0   ;;  %v246_v4 = vlaneseq  ;;  %v557_v5 = vld [vmem:[%s675_s0 + $0x30] sm:$0xff]   ;;  %vm578_vm0 = vmmov 0   ;;  %s498_s28 = sshll.u32 %s493_s24, 1  ;;  %v558_v7 = vld [vmem:[%s675_s0 + $0x28] sm:$0xff]  }
   0xe   : > { %526 = vmatprep.subr.bf16.mxu0 %v577_v3  ;;  %542 = vmatprep.mubr.msk.bf16.mxu0 %vm578_vm0, %v577_v3  ;;  %p223_p3 = scmp.lt.s32.totalorder %s498_s28, 3  ;;  %v559_v9 = vld [vmem:[%s675_s0 + $0x20] sm:$0xff]   ;;  %v560_v16 = vld [vmem:[%s675_s0 + $0x18] sm:$0xff]   ;;  %v561_v17 = vld [vmem:[%s675_s0 + $0x10] sm:$0xff]  }
   0xf   : > { %527 = vmatpush3.bf16.msra.mxu0 %v556_v2  ;;  %v247_v6 = vand.u32 127, %v246_v4  ;;  %v562_v18 = vld [vmem:[%s675_s0 + $0x8] sm:$0xff]   ;;  %v563_v19 = vld [vmem:[%s675_s0] sm:$0xff]  }
  0x10   : > { %528 = vmatprep.subr.bf16.mxu0 %v577_v3  ;;  %s683_s28 = smov (!%p223_p3, %s498_s28), 3  ;;  %v503_v21 = vld [vmem:[%s676_s1] ss:$0 sm:$0xff] }
  0x11   : > { %s499_s7 = sshll.u32 %s683_s28, 2  ;;  %vm249_vm1 = vcmp.lt.s32.totalorder %v247_v6, 48  ;;  %v513_v41 = vld [vmem:[%s677_s2] ss:$0 sm:$0xff]  ;;  %s501_s26 = sshll.u32 %s683_s28, 3 }
  0x12   : > { %s226_s10 = scalar_lea.vmem %s679_s4, %s499_s7  ;;  %v514_v44 = vld [vmem:[%s678_s3] ss:$0 sm:$0xff]  ;;  %s232_s7 = scalar_lea.vmem %s681_s6, %s501_s26 }
  0x13   : > { %529 = vmatpush3.bf16.msra.mxu0 %v557_v5  ;;  %v243_v8 = vld [vmem:[%s226_s10] sm:$0xff]  }
  0x14   : > { %530 = vmatprep.subr.bf16.mxu0 %v577_v3  ;;  %v244_v10 = vunpack.c.l.bf16 %v243_v8  ;;  %v266_v11 = vunpack.c.h.bf16 %v243_v8 }
  0x16   : > { %v250_v12 = vsel %vm249_vm1, %v244_v10, %v617_v1  ;;  %v272_v13 = vsel %vm249_vm1, %v266_v11, %v617_v1 }
  0x17   : > { %531 = vmatpush3.bf16.msra.mxu0 %v558_v7  ;;  %v251_v14 = vpack.c.bf16 %v577_v3, %v250_v12  ;;  %v274_v15 = vpack.c.bf16 %v577_v3, %v272_v13 }
  0x18   : > { %532 = vmatprep.subr.bf16.mxu0 %v577_v3 }
  0x19   : > { %254 = vst [vmem:[#allocation7] sm:$0xf] %v251_v14  ;;  %277 = vst [vmem:[#allocation7 + $0x4] sm:$0xf] %v274_v15 }
  0x1b   : > { %533 = vmatpush3.bf16.msra.mxu0 %v559_v9 }
  0x1c   : > { %534 = vmatprep.subr.bf16.mxu0 %v577_v3 }
  0x1f   : > { %535 = vmatpush3.bf16.msra.mxu0 %v560_v16 }
  0x20   : > { %536 = vmatprep.subr.bf16.mxu0 %v577_v3  ;;  %v564_v20 = vld [vmem:[#allocation7] sm:$0xff]  }
  0x23   : > { %537 = vmatpush3.bf16.msra.mxu0 %v561_v17 }
  0x24   : > { %538 = vmatprep.subr.bf16.mxu0 %v577_v3 }
  0x27   : > { %539 = vmatpush3.bf16.msra.mxu0 %v562_v18 }
  0x28   : > { %540 = vmatprep.subr.bf16.mxu0 %v577_v3 }
  0x2b   : > { %541 = vmatpush3.bf16.msra.mxu0 %v563_v19 }
  0x2e   : > { %543 = vmatmul.mubr.bf16.vlgmr.msra.gmra.mxu0 %v564_v20 }
  0xee   : > { %v392_v22 = vpop.f32.mrf.mxu0 }
  0xef   : > { %v393_v23 = vadd.f32 %v503_v21, %v392_v22 }
  0xf0   : > { %v544_v24 = vpop.f32.mrf.mxu0 }
  0xf1   : > { %v401_v25 = vmul.f32 0.044715, %v393_v23  ;;  %v399_v39 = vmul.f32 0.5, %v393_v23 }
  0xf2   : > { %v395_v26 = vpop.f32.mrf.mxu0 }
  0xf3   : > { %v403_v27 = vmul.f32 %v401_v25, %v393_v23  ;;  %v396_v28 = vadd.f32 %v503_v21, %v395_v26 }
  0xf4   : > { %v545_v29 = vpop.f32.mrf.mxu0 }
  0xf5   : > { %v405_v30 = vmul.f32 %v403_v27, %v393_v23  ;;  %v402_v31 = vmul.f32 0.044715, %v396_v28  ;;  %v400_v46 = vmul.f32 0.5, %v396_v28 }
  0xf7   : > { %v407_v32 = vadd.f32 %v405_v30, %v393_v23  ;;  %v404_v33 = vmul.f32 %v402_v31, %v396_v28 }
  0xf9   : > { %v409_v34 = vmul.f32 0.7978846, %v407_v32  ;;  %v406_v35 = vmul.f32 %v404_v33, %v396_v28 }
  0xfb   : > { %565 = vtanh.f32 %v409_v34  ;;  %v408_v36 = vadd.f32 %v406_v35, %v396_v28 }
  0xfd   : > { %v410_v37 = vmul.f32 0.7978846, %v408_v36 }
  0xff   : > { %567 = vtanh.f32 %v410_v37 }
 0x108   : > { %v566_v38 = vpop.eup %565 }
 0x109   : > { %v413_v40 = vadd.f32 1.0, %v566_v38 }
 0x10b   : > { %v415_v42 = vmul.f32 %v413_v40, %v399_v39 }
 0x10c   : > { %v568_v43 = vpop.eup %567 }
 0x10d   : > { %v424_v45 = vmul.f32 %v513_v41, %v415_v42  ;;  %v414_v47 = vadd.f32 1.0, %v568_v43 }
 0x10f   : > { %v433_v48 = vadd.f32 %v514_v44, %v424_v45  ;;  %v416_v49 = vmul.f32 %v414_v47, %v400_v46 }
 0x111   : > { %435 = vst [vmem:[%s232_s7] sm:$0xff] %v433_v48  ;;  %v425_v50 = vmul.f32 %v513_v41, %v416_v49 }
 0x113   : > { %v434_v51 = vadd.f32 %v514_v44, %v425_v50 }
 0x115   : > { %436 = vst [vmem:[%s232_s7 + $0x8] sm:$0xff] %v434_v51 }
 0x116 PF: > { %s21_s23 = sadd.s32 1, %s575_s23  }
 0x117   : > { %p18_p4 = scmp.ge.s32.totalorder %s21_s23, 4  }
 0x119   :  { %20 = sbr.rel (!%p18_p4) target bundleno = 3 (0x3), region = 72 }

// kernel: convmixer_forward.13
= control target key start
LH: loop header
LB: loop body
LE: loop exit
PB: predicated region body
PF: predicated region fallthrough
CT: control target
= control target key end

     0   :  { %s691_s26 = smov 0   ;;  %s750_s0 = inlined_call_operand.vmem [shape: bf16[128,128], index: 0, kind: input, shape index: {}]   ;;  %s751_s1 = inlined_call_operand.vmem [shape: f32[1,128], index: 1, kind: input, shape index: {}]   ;;  %s752_s2 = inlined_call_operand.vmem [shape: f32[1,128], index: 2, kind: input, shape index: {}]   ;;  %s753_s3 = inlined_call_operand.vmem [shape: f32[1,128], index: 3, kind: input, shape index: {}]   ;;  %s754_s4 = inlined_call_operand.vmem [shape: f32[32,128], index: 4, kind: input, shape index: {}]   ;;  %s755_s5 = inlined_call_operand.vmem [shape: bf16[32,32], index: 5, kind: input, shape index: {}]   ;;  %s756_s6 = inlined_call_operand.<no memory space> [shape: bf16[], index: 6, kind: input, shape index: {}]   ;;  %s757_s7 = inlined_call_operand.vmem [shape: f32[32,128], index: 7, kind: output, shape index: {}]  }
   0x1   :  { %v12_v0 = vstv %s756_s6 }
   0x2   :  { %v689_v1 = vunpack.i.l.bf16 %v12_v0 }
   0x3 LB: > { %s558_s27 = sadd.s32 4294967295, %s642_s26   ;;  %p562_p0 = scmp.ge.s32.totalorder %s642_s26, 1  ;;  %s642_s26 = sphi %s691_s26, %s22_s26  }
   0x4   : > { %p230_p1 = scmp.lt.s32.totalorder %s642_s26, 3 }
   0x6   : > { %p231_p2 = pnand %p562_p0, %p230_p1 }
   0x8   : > { %234 = sbr.rel (%p231_p2) target bundleno = 280 (0x118), region = 44 }
   0xd   : > { %v623_v2 = vld [vmem:[%s750_s0 + $0x38] sm:$0xff]   ;;  %v644_v3 = vmov 0.0   ;;  %v295_v4 = vlaneseq  ;;  %v624_v5 = vld [vmem:[%s750_s0 + $0x30] sm:$0xff]   ;;  %vm645_vm0 = vmmov 0   ;;  %s563_s8 = sshll.u32 %s558_s27, 1  ;;  %v625_v7 = vld [vmem:[%s750_s0 + $0x28] sm:$0xff]  }
   0xe   : > { %593 = vmatprep.subr.bf16.mxu0 %v644_v3  ;;  %609 = vmatprep.mubr.msk.bf16.mxu0 %vm645_vm0, %v644_v3  ;;  %p266_p3 = scmp.lt.s32.totalorder %s563_s8, 3  ;;  %v626_v9 = vld [vmem:[%s750_s0 + $0x20] sm:$0xff]   ;;  %v627_v16 = vld [vmem:[%s750_s0 + $0x18] sm:$0xff]   ;;  %v628_v17 = vld [vmem:[%s750_s0 + $0x10] sm:$0xff]  }
   0xf   : > { %594 = vmatpush3.bf16.msra.mxu0 %v623_v2  ;;  %v296_v6 = vand.u32 127, %v295_v4  ;;  %v629_v18 = vld [vmem:[%s750_s0 + $0x8] sm:$0xff]   ;;  %v630_v19 = vld [vmem:[%s750_s0] sm:$0xff]  }
  0x10   : > { %595 = vmatprep.subr.bf16.mxu0 %v644_v3  ;;  %s759_s8 = smov (!%p266_p3, %s563_s8), 3  ;;  %v570_v21 = vld [vmem:[%s751_s1] ss:$0 sm:$0xff] }
  0x11   : > { %s564_s11 = sshll.u32 %s759_s8, 2  ;;  %vm298_vm1 = vcmp.lt.s32.totalorder %v296_v6, 32  ;;  %s566_s28 = sshll.u32 %s759_s8, 3  ;;  %v580_v41 = vld [vmem:[%s752_s2] ss:$0 sm:$0xff] }
  0x12   : > { %s269_s14 = scalar_lea.vmem %s755_s5, %s564_s11  ;;  %s275_s10 = scalar_lea.vmem %s754_s4, %s566_s28  ;;  %v581_v44 = vld [vmem:[%s753_s3] ss:$0 sm:$0xff] }
  0x13   : > { %596 = vmatpush3.bf16.msra.mxu0 %v624_v5  ;;  %v292_v8 = vld [vmem:[%s269_s14] sm:$0xff]   ;;  %s281_s14 = scalar_lea.vmem %s757_s7, %s566_s28  ;;  %v485_v53 = vld [vmem:[%s275_s10 + $0x8] sm:$0xff] }
  0x14   : > { %597 = vmatprep.subr.bf16.mxu0 %v644_v3  ;;  %v293_v10 = vunpack.c.l.bf16 %v292_v8  ;;  %v315_v11 = vunpack.c.h.bf16 %v292_v8  ;;  %v484_v48 = vld [vmem:[%s275_s10] sm:$0xff] }
  0x16   : > { %v299_v12 = vsel %vm298_vm1, %v293_v10, %v689_v1  ;;  %v321_v13 = vsel %vm298_vm1, %v315_v11, %v689_v1 }
  0x17   : > { %598 = vmatpush3.bf16.msra.mxu0 %v625_v7  ;;  %v300_v14 = vpack.c.bf16 %v644_v3, %v299_v12  ;;  %v323_v15 = vpack.c.bf16 %v644_v3, %v321_v13 }
  0x18   : > { %599 = vmatprep.subr.bf16.mxu0 %v644_v3 }
  0x19   : > { %303 = vst [vmem:[#allocation7] sm:$0xf] %v300_v14  ;;  %326 = vst [vmem:[#allocation7 + $0x4] sm:$0xf] %v323_v15 }
  0x1b   : > { %600 = vmatpush3.bf16.msra.mxu0 %v626_v9 }
  0x1c   : > { %601 = vmatprep.subr.bf16.mxu0 %v644_v3 }
  0x1f   : > { %602 = vmatpush3.bf16.msra.mxu0 %v627_v16 }
  0x20   : > { %603 = vmatprep.subr.bf16.mxu0 %v644_v3  ;;  %v631_v20 = vld [vmem:[#allocation7] sm:$0xff]  }
  0x23   : > { %604 = vmatpush3.bf16.msra.mxu0 %v628_v17 }
  0x24   : > { %605 = vmatprep.subr.bf16.mxu0 %v644_v3 }
  0x27   : > { %606 = vmatpush3.bf16.msra.mxu0 %v629_v18 }
  0x28   : > { %607 = vmatprep.subr.bf16.mxu0 %v644_v3 }
  0x2b   : > { %608 = vmatpush3.bf16.msra.mxu0 %v630_v19 }
  0x2e   : > { %610 = vmatmul.mubr.bf16.vlgmr.msra.gmra.mxu0 %v631_v20 }
  0xee   : > { %v441_v22 = vpop.f32.mrf.mxu0 }
  0xef   : > { %v442_v23 = vadd.f32 %v570_v21, %v441_v22 }
  0xf0   : > { %v611_v24 = vpop.f32.mrf.mxu0 }
  0xf1   : > { %v450_v25 = vmul.f32 0.044715, %v442_v23  ;;  %v448_v39 = vmul.f32 0.5, %v442_v23 }
  0xf2   : > { %v444_v26 = vpop.f32.mrf.mxu0 }
  0xf3   : > { %v452_v27 = vmul.f32 %v450_v25, %v442_v23  ;;  %v445_v28 = vadd.f32 %v570_v21, %v444_v26 }
  0xf4   : > { %v612_v29 = vpop.f32.mrf.mxu0 }
  0xf5   : > { %v454_v30 = vmul.f32 %v452_v27, %v442_v23  ;;  %v451_v31 = vmul.f32 0.044715, %v445_v28  ;;  %v449_v46 = vmul.f32 0.5, %v445_v28 }
  0xf7   : > { %v456_v32 = vadd.f32 %v454_v30, %v442_v23  ;;  %v453_v33 = vmul.f32 %v451_v31, %v445_v28 }
  0xf9   : > { %v458_v34 = vmul.f32 0.7978846, %v456_v32  ;;  %v455_v35 = vmul.f32 %v453_v33, %v445_v28 }
  0xfb   : > { %632 = vtanh.f32 %v458_v34  ;;  %v457_v36 = vadd.f32 %v455_v35, %v445_v28 }
  0xfd   : > { %v459_v37 = vmul.f32 0.7978846, %v457_v36 }
  0xff   : > { %634 = vtanh.f32 %v459_v37 }
 0x108   : > { %v633_v38 = vpop.eup %632 }
 0x109   : > { %v462_v40 = vadd.f32 1.0, %v633_v38 }
 0x10b   : > { %v464_v42 = vmul.f32 %v462_v40, %v448_v39 }
 0x10c   : > { %v635_v43 = vpop.eup %634 }
 0x10d   : > { %v473_v45 = vmul.f32 %v580_v41, %v464_v42  ;;  %v463_v47 = vadd.f32 1.0, %v635_v43 }
 0x10f   : > { %v482_v49 = vadd.f32 %v581_v44, %v473_v45  ;;  %v465_v50 = vmul.f32 %v463_v47, %v449_v46 }
 0x111   : > { %v486_v51 = vadd.f32 %v484_v48, %v482_v49  ;;  %v474_v52 = vmul.f32 %v580_v41, %v465_v50 }
 0x113   : > { %488 = vst [vmem:[%s281_s14] sm:$0xff] %v486_v51  ;;  %v483_v54 = vadd.f32 %v581_v44, %v474_v52 }
 0x115   : > { %v487_v55 = vadd.f32 %v485_v53, %v483_v54 }
 0x117   : > { %489 = vst [vmem:[%s281_s14 + $0x8] sm:$0xff] %v487_v55 }
 0x118 PF: > { %s22_s26 = sadd.s32 1, %s642_s26  }
 0x119   : > { %p19_p4 = scmp.ge.s32.totalorder %s22_s26, 4  }
 0x11b   :  { %21 = sbr.rel (!%p19_p4) target bundleno = 3 (0x3), region = 79 }

// kernel: convmixer_forward.9
= control target key start
LH: loop header
LB: loop body
LE: loop exit
PB: predicated region body
PF: predicated region fallthrough
CT: control target
= control target key end

     0   :  { %s640_s12 = smov 0   ;;  %s642_s13 = smov 0   ;;  %s693_s0 = inlined_call_operand.vmem [shape: f32[2,4,4,32], index: 0, kind: input, shape index: {}]   ;;  %s694_s1 = inlined_call_operand.vmem [shape: f32[3,3,32], index: 1, kind: input, shape index: {}]   ;;  %s695_s2 = inlined_call_operand.vmem [shape: f32[1,32], index: 2, kind: input, shape index: {}]   ;;  %s696_s3 = inlined_call_operand.vmem [shape: bf16[2,4,4,32], index: 3, kind: output, shape index: {}]  }
   0x1   :  { %s644_s14 = smov 0  }
   0x2 LB: > { %s25_s15 = sadd.s32 1, %s613_s13  ;;  %p552_p0 = scmp.ge.s32.totalorder %s617_s14, 1  ;;  %s617_s14 = sphi %s644_s14, %s13_s14   ;;  %s613_s13 = sphi %s642_s13, %s698_s13   ;;  %s609_s12 = sphi %s640_s12, %s697_s12  }
   0x3   : > { %p27_p1 = scmp.ge.s32.totalorder %s25_s15, 2  ;;  %p173_p2 = scmp.lt.s32.totalorder %s617_s14, 3 }
   0x5   : > { %s700_s15 = smov (%p27_p1, %s25_s15), 0  ;;  %p174_p3 = pnand %p552_p0, %p173_p2 }
   0x6   : > { %p210_p4 = scmp.lt.s32.totalorder (!%p174_p3), %s609_s12, 1 }
   0x7   : > { %177 = sbr.rel (%p174_p3) target bundleno = 79 (0x4f), region = 32 }
   0xc   : > { %vm233_vm0 = vcmask 259072   ;;  %v259_v0 = vlaneseq  ;;  %v619_v1 = vmov 0.0   ;;  %s702_s12 = smov (!%p210_p4, %s609_s12), 1  ;;  %vm245_vm1 = vcmask 257024   ;;  %v250_v3 = vld [vmem:[%s694_s1] sm:$0x7] }
   0xd   : > { %235 = vst.msk [vmem:[#allocation2 + $0x8] sm:$0x3f] %vm233_vm0, %v619_v1  ;;  %234 = vst.msk [vmem:[#allocation2] sm:$0x3f] %vm233_vm0, %v619_v1  ;;  %s560_s16 = sshll.u32 %s702_s12, 4  ;;  %s561_s28 = sshll.u32 %s702_s12, 3 }
   0xe   : > { %236 = vst.msk [vmem:[#allocation2 + $0x10] sm:$0x3f] %vm233_vm0, %v619_v1  ;;  %237 = vst.msk [vmem:[#allocation2 + $0x18] sm:$0x3f] %vm233_vm0, %v619_v1  ;;  %v260_v2 = vshrl.u32 %v259_v0, 7  ;;  %s217_s21 = scalar_lea.vmem %s693_s0, %s560_s16  ;;  %s232_s4 = scalar_lea.vmem %s696_s3, %s561_s28  ;;  %vm430_vm2 = vcmask 254976  }
   0xf   : > { %238 = vst.msk [vmem:[#allocation2 + $0x20] sm:$0x3f] %vm233_vm0, %v619_v1  ;;  %239 = vst.msk [vmem:[#allocation2 + $0x28] sm:$0x3f] %vm233_vm0, %v619_v1  ;;  %v240_v5 = vld [vmem:[%s217_s21] sm:$0xf] }
  0x10   : > { %v261_v4 = vsub.s32 0, %v260_v2  ;;  %v241_v6 = vld [vmem:[%s217_s21 + $0x4] sm:$0xf]  ;;  %v242_v7 = vld [vmem:[%s217_s21 + $0x8] sm:$0xf]  ;;  %v303_v13 = vsub.s32 1, %v260_v2 }
  0x11   : > { %246 = vst.msk [vmem:[#allocation2 + $0x9] sm:$0xf] %vm245_vm1, %v240_v5  ;;  %247 = vst.msk [vmem:[#allocation2 + $0x11] sm:$0xf] %vm245_vm1, %v241_v6  ;;  %v243_v8 = vld [vmem:[%s217_s21 + $0xc] sm:$0xf] }
  0x12   : > { %248 = vst.msk [vmem:[#allocation2 + $0x19] sm:$0xf] %vm245_vm1, %v242_v7  ;;  %v251_v9 = vld [vmem:[%s694_s1 + $0x4] sm:$0x7]  ;;  %249 = vst.msk [vmem:[#allocation2 + $0x21] sm:$0xf] %vm245_vm1, %v243_v8  ;;  %v262_v10 = vrot.slane %v250_v3, %v261_v4  ;;  %v304_v20 = vrot.slane %v250_v3, %v303_v13 }
  0x13   : > { %v252_v12 = vld [vmem:[%s694_s1 + $0x8] sm:$0x7]  ;;  %v274_v14 = vrot.slane %v251_v9, %v261_v4  ;;  %v345_v19 = vsub.s32 2, %v260_v2  ;;  %v316_v29 = vrot.slane %v251_v9, %v303_v13 }
  0x14   : > { %v253_v11 = vld [vmem:[#allocation2] sm:$0xf]  ;;  %v286_v16 = vrot.slane %v252_v12, %v261_v4  ;;  %v328_v36 = vrot.slane %v252_v12, %v303_v13 }
  0x15   : > { %v263_v15 = vmul.f32 %v262_v10, %v253_v11  ;;  %v295_v25 = vld [vmem:[#allocation2 + $0x1] sm:$0xf]  ;;  %v346_v37 = vrot.slane %v250_v3, %v345_v19  ;;  %v358_v54 = vrot.slane %v251_v9, %v345_v19  ;;  %v370_v55 = vrot.slane %v252_v12, %v345_v19 }
  0x16   : > { %v258_v30 = vld [vmem:[#allocation2 + $0x28] sm:$0xf]  ;;  %v305_v38 = vmul.f32 %v304_v20, %v295_v25  ;;  %v337_v49 = vld [vmem:[#allocation2 + $0x2] sm:$0xf] }
  0x17   : > { %v290_v46 = vmul.f32 %v286_v16, %v258_v30  ;;  %v347_v63 = vmul.f32 %v346_v37, %v337_v49  ;;  %v300_v8 = vld [vmem:[#allocation2 + $0x29] sm:$0xf] }
  0x18   : > { %v254_v17 = vld [vmem:[#allocation2 + $0x8] sm:$0xf]  ;;  %v255_v18 = vld [vmem:[#allocation2 + $0x10] sm:$0xf] }
  0x19   : > { %v264_v21 = vmul.f32 %v262_v10, %v254_v17  ;;  %v275_v22 = vmul.f32 %v274_v14, %v254_v17  ;;  %v256_v23 = vld [vmem:[#allocation2 + $0x18] sm:$0xf]  ;;  %v257_v24 = vld [vmem:[#allocation2 + $0x20] sm:$0xf]  ;;  %v276_v26 = vmul.f32 %v274_v14, %v255_v18  ;;  %v296_v32 = vld [vmem:[#allocation2 + $0x9] sm:$0xf]  ;;  %v265_v33 = vmul.f32 %v262_v10, %v255_v18 }
  0x1a   : > { %v266_v27 = vmul.f32 %v262_v10, %v256_v23  ;;  %v278_v28 = vmul.f32 %v274_v14, %v257_v24  ;;  %v277_v34 = vmul.f32 %v274_v14, %v256_v23  ;;  %v287_v35 = vmul.f32 %v286_v16, %v255_v18  ;;  %v297_v40 = vld [vmem:[#allocation2 + $0x11] sm:$0xf]  ;;  %v298_v51 = vld [vmem:[#allocation2 + $0x19] sm:$0xf]  ;;  %v338_v58 = vld [vmem:[#allocation2 + $0xa] sm:$0xf] }
  0x1b   : > { %v279_v31 = vadd.f32 %v275_v22, %v263_v15  ;;  %v280_v41 = vadd.f32 %v276_v26, %v264_v21  ;;  %v288_v42 = vmul.f32 %v286_v16, %v256_v23  ;;  %v306_v43 = vmul.f32 %v304_v20, %v296_v32  ;;  %v299_v61 = vld [vmem:[#allocation2 + $0x21] sm:$0xf]  ;;  %v339_v4 = vld [vmem:[#allocation2 + $0x12] sm:$0xf]  ;;  %v340_v15 = vld [vmem:[#allocation2 + $0x1a] sm:$0xf] }
  0x1c   : > { %v282_v44 = vadd.f32 %v278_v28, %v266_v27  ;;  %v289_v45 = vmul.f32 %v286_v16, %v257_v24  ;;  %v317_v48 = vmul.f32 %v316_v29, %v296_v32  ;;  %v281_v52 = vadd.f32 %v277_v34, %v265_v33  ;;  %v341_v25 = vld [vmem:[#allocation2 + $0x22] sm:$0xf]  ;;  %v557_v27 = vld [vmem:[%s695_s2] ss:$0 sm:$0xff] }
  0x1d   : > { %v291_v39 = vadd.f32 %v287_v35, %v279_v31  ;;  %v292_v50 = vadd.f32 %v288_v42, %v280_v41  ;;  %v329_v53 = vmul.f32 %v328_v36, %v297_v40  ;;  %v318_v56 = vmul.f32 %v316_v29, %v297_v40  ;;  %v342_v35 = vld [vmem:[#allocation2 + $0x2a] sm:$0xf] }
  0x1e   : > { %v293_v60 = vadd.f32 %v289_v45, %v281_v52  ;;  %v307_v62 = vmul.f32 %v304_v20, %v297_v40  ;;  %v330_v0 = vmul.f32 %v328_v36, %v298_v51  ;;  %v294_v1 = vadd.f32 %v290_v46, %v282_v44 }
  0x1f   : > { %v309_v47 = vadd.f32 %v305_v38, %v291_v39  ;;  %v310_v59 = vadd.f32 %v306_v43, %v292_v50  ;;  %v308_v2 = vmul.f32 %v304_v20, %v298_v51  ;;  %v319_v7 = vmul.f32 %v316_v29, %v298_v51 }
  0x20   : > { %v311_v6 = vadd.f32 %v307_v62, %v293_v60  ;;  %v359_v10 = vmul.f32 %v358_v54, %v338_v58  ;;  %v348_v9 = vmul.f32 %v346_v37, %v338_v58  ;;  %v320_v12 = vmul.f32 %v316_v29, %v299_v61 }
  0x21   : > { %v321_v57 = vadd.f32 %v317_v48, %v309_v47  ;;  %v322_v5 = vadd.f32 %v318_v56, %v310_v59  ;;  %v312_v11 = vadd.f32 %v308_v2, %v294_v1  ;;  %v331_v17 = vmul.f32 %v328_v36, %v299_v61 }
  0x22   : > { %v323_v16 = vadd.f32 %v319_v7, %v311_v6  ;;  %v371_v18 = vmul.f32 %v370_v55, %v339_v4  ;;  %v360_v19 = vmul.f32 %v358_v54, %v339_v4  ;;  %v332_v22 = vmul.f32 %v328_v36, %v300_v8 }
  0x23   : > { %v333_v3 = vadd.f32 %v329_v53, %v321_v57  ;;  %v334_v14 = vadd.f32 %v330_v0, %v322_v5  ;;  %v324_v21 = vadd.f32 %v320_v12, %v312_v11  ;;  %v349_v26 = vmul.f32 %v346_v37, %v339_v4 }
  0x24   : > { %v335_v24 = vadd.f32 %v331_v17, %v323_v16  ;;  %v372_v28 = vmul.f32 %v370_v55, %v340_v15  ;;  %v350_v30 = vmul.f32 %v346_v37, %v340_v15  ;;  %v361_v34 = vmul.f32 %v358_v54, %v340_v15 }
  0x25   : > { %v351_v13 = vadd.f32 %v347_v63, %v333_v3  ;;  %v352_v23 = vadd.f32 %v348_v9, %v334_v14  ;;  %v336_v29 = vadd.f32 %v332_v22, %v324_v21  ;;  %v362_v39 = vmul.f32 %v358_v54, %v341_v25 }
  0x26   : > { %v353_v33 = vadd.f32 %v349_v26, %v335_v24  ;;  %v373_v42 = vmul.f32 %v370_v55, %v341_v25  ;;  %v374_v44 = vmul.f32 %v370_v55, %v342_v35 }
  0x27   : > { %v363_v20 = vadd.f32 %v359_v10, %v351_v13  ;;  %v364_v32 = vadd.f32 %v360_v19, %v352_v23  ;;  %v354_v38 = vadd.f32 %v350_v30, %v336_v29 }
  0x28   : > { %v365_v41 = vadd.f32 %v361_v34, %v353_v33 }
  0x29   : > { %v375_v31 = vadd.f32 %v371_v18, %v363_v20  ;;  %v376_v40 = vadd.f32 %v372_v28, %v364_v32  ;;  %v366_v43 = vadd.f32 %v362_v39, %v354_v38 }
  0x2a   : > { %v377_v47 = vadd.f32 %v373_v42, %v365_v41 }
  0x2b   : > { %v386_v36 = vadd.f32 %v557_v27, %v375_v31  ;;  %v387_v46 = vadd.f32 %v557_v27, %v376_v40  ;;  %v378_v48 = vadd.f32 %v374_v44, %v366_v43 }
  0x2c   : > { %v388_v37 = vadd.f32 %v557_v27, %v377_v47 }
  0x2d   : > { %v394_v45 = vmul.f32 0.044715, %v386_v36  ;;  %v395_v50 = vmul.f32 0.044715, %v387_v46  ;;  %v389_v51 = vadd.f32 %v557_v27, %v378_v48  ;;  %v390_v6 = vmul.f32 0.5, %v386_v36 }
  0x2e   : > { %v396_v56 = vmul.f32 0.044715, %v388_v37  ;;  %v391_v9 = vmul.f32 0.5, %v387_v46  ;;  %v392_v16 = vmul.f32 0.5, %v388_v37 }
  0x2f   : > { %v398_v49 = vmul.f32 %v394_v45, %v386_v36  ;;  %v399_v53 = vmul.f32 %v395_v50, %v387_v46  ;;  %v397_v57 = vmul.f32 0.044715, %v389_v51  ;;  %v393_v18 = vmul.f32 0.5, %v389_v51 }
  0x30   : > { %v400_v59 = vmul.f32 %v396_v56, %v388_v37 }
  0x31   : > { %v402_v52 = vmul.f32 %v398_v49, %v386_v36  ;;  %v403_v54 = vmul.f32 %v399_v53, %v387_v46  ;;  %v401_v60 = vmul.f32 %v397_v57, %v389_v51 }
  0x32   : > { %v404_v55 = vmul.f32 %v400_v59, %v388_v37 }
  0x33   : > { %v406_v58 = vadd.f32 %v402_v52, %v386_v36  ;;  %v407_v62 = vadd.f32 %v403_v54, %v387_v46  ;;  %v405_v63 = vmul.f32 %v401_v60, %v389_v51 }
  0x34   : > { %v408_v1 = vadd.f32 %v404_v55, %v388_v37 }
  0x35   : > { %v410_v61 = vmul.f32 0.7978846, %v406_v58  ;;  %v411_v0 = vmul.f32 0.7978846, %v407_v62  ;;  %v409_v2 = vadd.f32 %v405_v63, %v389_v51 }
  0x36   : > { %v412_v3 = vmul.f32 0.7978846, %v408_v1 }
  0x37   : > { %587 = vtanh.f32 %v410_v61  ;;  %v413_v4 = vmul.f32 0.7978846, %v409_v2 }
  0x38   : > { %589 = vtanh.f32 %v411_v0 }
  0x39   : > { %591 = vtanh.f32 %v412_v3 }
  0x3a   : > { %593 = vtanh.f32 %v413_v4 }
  0x44   : > { %v588_v5 = vpop.eup %587 }
  0x45   : > { %v418_v7 = vadd.f32 1.0, %v588_v5  ;;  %v590_v8 = vpop.eup %589 }
  0x46   : > { %v419_v11 = vadd.f32 1.0, %v590_v8  ;;  %v592_v12 = vpop.eup %591 }
  0x47   : > { %v422_v10 = vmul.f32 %v418_v7, %v390_v6  ;;  %v594_v13 = vpop.eup %593  ;;  %v420_v17 = vadd.f32 1.0, %v592_v12 }
  0x48   : > { %v423_v15 = vmul.f32 %v419_v11, %v391_v9  ;;  %v421_v19 = vadd.f32 1.0, %v594_v13 }
  0x49   : > { %v426_v14 = vpack.c.bf16 %v422_v10, %v422_v10  ;;  %v424_v22 = vmul.f32 %v420_v17, %v392_v16 }
  0x4a   : > { %v427_v21 = vpack.c.bf16 %v423_v15, %v423_v15  ;;  %v425_v20 = vmul.f32 %v421_v19, %v393_v18 }
  0x4b   : > { %431 = vst.msk [vmem:[%s232_s4] sm:$0x3] %vm430_vm2, %v426_v14  ;;  %v428_v23 = vpack.c.bf16 %v424_v22, %v424_v22 }
  0x4c   : > { %432 = vst.msk [vmem:[%s232_s4 + $0x2] sm:$0x3] %vm430_vm2, %v427_v21  ;;  %v429_v24 = vpack.c.bf16 %v425_v20, %v425_v20 }
  0x4d   : > { %433 = vst.msk [vmem:[%s232_s4 + $0x4] sm:$0x3] %vm430_vm2, %v428_v23 }
  0x4e   : > { %434 = vst.msk [vmem:[%s232_s4 + $0x6] sm:$0x3] %vm430_vm2, %v429_v24 }
  0x4f PF: > { %s13_s14 = sadd.s32 1, %s617_s14   ;;  %s697_s12 = smov %s613_s13 }
  0x50   : > { %p10_p5 = scmp.ge.s32.totalorder %s13_s14, 4   ;;  %s698_s13 = smov %s700_s15 }
  0x52   :  { %12 = sbr.rel (!%p10_p5) target bundleno = 2 (0x2), region = 69 }

// kernel: convmixer_forward.11
= control target key start
LH: loop header
LB: loop body
LE: loop exit
PB: predicated region body
PF: predicated region fallthrough
CT: control target
= control target key end

     0   :  { %v192_v0 = vmov 0.0   ;;  %vm193_vm0 = vmmov 0   ;;  %s287_s1 = inlined_call_operand.vmem [shape: f32[128,128], index: 1, kind: input, shape index: {}]   ;;  %s288_s0 = inlined_call_operand.vmem [shape: f32[8,128], index: 0, kind: input, shape index: {}]   ;;  %s289_s2 = inlined_call_operand.vmem [shape: f32[1,128], index: 2, kind: input, shape index: {}]   ;;  %s290_s3 = inlined_call_operand.vmem [shape: f32[1,128], index: 3, kind: input, shape index: {}]   ;;  %s291_s4 = inlined_call_operand.vmem [shape: f32[1,128], index: 4, kind: input, shape index: {}]   ;;  %s292_s5 = inlined_call_operand.vmem [shape: f32[8,128], index: 5, kind: output, shape index: {}]  }
   0x1   :  { %155 = vmatprep.subr.mxu0 %v192_v0  ;;  %v36_v1 = vld [vmem:[%s287_s1 + $0x78] sm:$0xff]  ;;  %v35_v2 = vld [vmem:[%s287_s1 + $0x70] sm:$0xff]  ;;  %187 = vmatprep.mubr.msk.f32.mxu0 %vm193_vm0, %v192_v0  ;;  %v34_v3 = vld [vmem:[%s287_s1 + $0x68] sm:$0xff] }
   0x2   :  { %156 = vmatpush3.msra.mxu0 %v36_v1  ;;  %v33_v4 = vld [vmem:[%s287_s1 + $0x60] sm:$0xff]  ;;  %v32_v5 = vld [vmem:[%s287_s1 + $0x58] sm:$0xff]  ;;  %v31_v6 = vld [vmem:[%s287_s1 + $0x50] sm:$0xff] }
   0x3   :  { %157 = vmatprep.subr.mxu0 %v192_v0  ;;  %v30_v7 = vld [vmem:[%s287_s1 + $0x48] sm:$0xff]  ;;  %v29_v8 = vld [vmem:[%s287_s1 + $0x40] sm:$0xff]  ;;  %v28_v9 = vld [vmem:[%s287_s1 + $0x38] sm:$0xff] }
   0x4   :  { %158 = vmatpush3.msra.mxu0 %v35_v2  ;;  %v27_v10 = vld [vmem:[%s287_s1 + $0x30] sm:$0xff]  ;;  %v26_v11 = vld [vmem:[%s287_s1 + $0x28] sm:$0xff]  ;;  %v25_v12 = vld [vmem:[%s287_s1 + $0x20] sm:$0xff] }
   0x5   :  { %159 = vmatprep.subr.mxu0 %v192_v0  ;;  %v24_v13 = vld [vmem:[%s287_s1 + $0x18] sm:$0xff]  ;;  %v23_v14 = vld [vmem:[%s287_s1 + $0x10] sm:$0xff]  ;;  %v22_v15 = vld [vmem:[%s287_s1 + $0x8] sm:$0xff] }
   0x6   :  { %160 = vmatpush3.msra.mxu0 %v34_v3  ;;  %v21_v16 = vld [vmem:[%s287_s1] sm:$0xff] }
   0x7   :  { %161 = vmatprep.subr.mxu0 %v192_v0  ;;  %v20_v17 = vld [vmem:[%s288_s0] sm:$0xff] }
   0x8   :  { %162 = vmatpush3.msra.mxu0 %v33_v4  ;;  %v135_v18 = vld [vmem:[%s289_s2] ss:$0 sm:$0xff] }
   0x9   :  { %163 = vmatprep.subr.mxu0 %v192_v0  ;;  %v136_v20 = vld [vmem:[%s290_s3] ss:$0 sm:$0xff] }
   0xa   :  { %164 = vmatpush3.msra.mxu0 %v32_v5  ;;  %v137_v22 = vld [vmem:[%s291_s4] ss:$0 sm:$0xff] }
   0xb   :  { %165 = vmatprep.subr.mxu0 %v192_v0 }
   0xc   :  { %166 = vmatpush3.msra.mxu0 %v31_v6 }
   0xd   :  { %167 = vmatprep.subr.mxu0 %v192_v0 }
   0xe   :  { %168 = vmatpush3.msra.mxu0 %v30_v7 }
   0xf   :  { %169 = vmatprep.subr.mxu0 %v192_v0 }
  0x10   :  { %170 = vmatpush3.msra.mxu0 %v29_v8 }
  0x11   :  { %171 = vmatprep.subr.mxu0 %v192_v0 }
  0x12   :  { %172 = vmatpush3.msra.mxu0 %v28_v9 }
  0x13   :  { %173 = vmatprep.subr.mxu0 %v192_v0 }
  0x14   :  { %174 = vmatpush3.msra.mxu0 %v27_v10 }
  0x15   :  { %175 = vmatprep.subr.mxu0 %v192_v0 }
  0x16   :  { %176 = vmatpush3.msra.mxu0 %v26_v11 }
  0x17   :  { %177 = vmatprep.subr.mxu0 %v192_v0 }
  0x18   :  { %178 = vmatpush3.msra.mxu0 %v25_v12 }
  0x19   :  { %179 = vmatprep.subr.mxu0 %v192_v0 }
  0x1a   :  { %180 = vmatpush3.msra.mxu0 %v24_v13 }
  0x1b   :  { %181 = vmatprep.subr.mxu0 %v192_v0 }
  0x1c   :  { %182 = vmatpush3.msra.mxu0 %v23_v14 }
  0x1d   :  { %183 = vmatprep.subr.mxu0 %v192_v0 }
  0x1e   :  { %184 = vmatpush3.msra.mxu0 %v22_v15 }
  0x1f   :  { %185 = vmatprep.subr.mxu0 %v192_v0 }
  0x20   :  { %186 = vmatpush3.msra.mxu0 %v21_v16 }
  0x21   :  { %188 = vmatmul.mubr.f32.vlgmr.msra.gmra.mxu0 %v20_v17 }
  0xe1   :  { %v110_v19 = vpop.f32.mrf.mxu0 }
  0xe2   :  { %v111_v21 = vadd.f32 %v135_v18, %v110_v19 }
  0xe3   :  { %v189_v23 = vpop.f32.mrf.mxu0 }
  0xe4   :  { %v121_v24 = vmul.f32 %v136_v20, %v111_v21 }
  0xe6   :  { %v129_v25 = vadd.f32 %v137_v22, %v121_v24 }
  0xe8   :  { %130 = vst [vmem:[%s292_s5] sm:$0xff] %v129_v25 }

</bundles_post_ra>
